<compile_context>
chip_gen: v5e
topology: v5e:2x2
jax: 0.10.0
libtpu: 0.0.40
codegen_flags: <defaults>
</compile_context>

<pallas_src>
import jax
import jax.numpy as jnp
from jax.experimental import pallas as pl
from jax.experimental.pallas import tpu as pltpu


def _round_up(x, m):
    return ((x + m - 1) // m) * m


# --------------------------------------------------------------------------
# Kernels
# --------------------------------------------------------------------------
def _gin_agg_then_linear_kernel(eps_ref, adj_ref, hk_ref, hi_ref, w_ref, b_ref,
                                out_ref, acc_ref):
    """Path A (Din <= Dout): accumulate A@H over k, then fuse skip+linear+relu.

    eps_ref : SMEM (1,)             epsilon
    adj_ref : VMEM (tm, tk)         adjacency tile
    hk_ref  : VMEM (tk, Din_p)      feature k-slice (aggregation operand)
    hi_ref  : VMEM (tm, Din_p)      feature i-slice (for the (1+eps)*h skip)
    w_ref   : VMEM (Din_p, Dout_p)  W.T (padded)
    b_ref   : VMEM (1, Dout_p)      bias (padded)
    out_ref : VMEM (tm, Dout_p)
    acc_ref : VMEM (tm, Din_p)      f32 accumulator scratch
    """
    k = pl.program_id(1)

    @pl.when(k == 0)
    def _init():
        acc_ref[...] = jnp.zeros_like(acc_ref)

    acc_ref[...] += jnp.dot(adj_ref[...], hk_ref[...],
                            preferred_element_type=jnp.float32)

    @pl.when(k == pl.num_programs(1) - 1)
    def _finalize():
        scale = 1.0 + eps_ref[0]                      # single SMEM scalar read
        rst = scale * hi_ref[...] + acc_ref[...]
        y = jnp.dot(rst, w_ref[...],
                    preferred_element_type=jnp.float32) + b_ref[...]
        out_ref[...] = jnp.maximum(y, 0.0).astype(out_ref.dtype)


def _gin_agg_only_kernel(eps_ref, adj_ref, hwk_ref, hwi_ref, b_ref,
                         out_ref, acc_ref):
    """Path B (Dout < Din): inputs are HW = H @ W.T; accumulate A@HW, then fuse
    (1+eps)*HW skip + bias + relu (linearity lets W distribute over the sum)."""
    k = pl.program_id(1)

    @pl.when(k == 0)
    def _init():
        acc_ref[...] = jnp.zeros_like(acc_ref)

    acc_ref[...] += jnp.dot(adj_ref[...], hwk_ref[...],
                            preferred_element_type=jnp.float32)

    @pl.when(k == pl.num_programs(1) - 1)
    def _finalize():
        scale = 1.0 + eps_ref[0]
        y = scale * hwi_ref[...] + acc_ref[...] + b_ref[...]
        out_ref[...] = jnp.maximum(y, 0.0).astype(out_ref.dtype)


def _linear_kernel(h_ref, w_ref, out_ref):
    """HW = H @ W.T (no bias) -- row-tiled helper for path B."""
    out_ref[...] = jnp.dot(h_ref[...], w_ref[...],
                           preferred_element_type=jnp.float32)


# --------------------------------------------------------------------------
# Wrappers
# --------------------------------------------------------------------------
def _apply_linear(h_p, w_p, *, tm):
    n_pad, d_in_p = h_p.shape
    d_out_p = w_p.shape[1]
    return pl.pallas_call(
        _linear_kernel,
        out_shape=jax.ShapeDtypeStruct((n_pad, d_out_p), jnp.float32),
        grid_spec=pltpu.PrefetchScalarGridSpec(
            num_scalar_prefetch=0,
            grid=(n_pad // tm,),
            in_specs=[
                pl.BlockSpec((tm, d_in_p), lambda i: (i, 0)),
                pl.BlockSpec((d_in_p, d_out_p), lambda i: (0, 0)),
            ],
            out_specs=pl.BlockSpec((tm, d_out_p), lambda i: (i, 0)),
        ),
        compiler_params=pltpu.CompilerParams(
            dimension_semantics=("parallel",),
        ),
    )(h_p, w_p)


def gin_conv(adj, feat, w_t, b, eps, *, tm=256, tk=512):
    """Fused GIN forward: relu(((1+eps)*H + A @ H) @ W.T + b).

    adj : (N, N)      dense aggregation matrix, adj[i, j] = weight of edge j->i
    feat: (N, Din)    node features
    w_t : (Din, Dout) nn.Linear weight, transposed
    b   : (Dout,)     nn.Linear bias
    eps : float

    Note for v5e: use tm=128, tk=256 to match the 128-wide MXU and the smaller
    default scoped-VMEM budget.
    """
    N, d_in = feat.shape
    d_out = w_t.shape[1]

    # Lane-dense padding (multiples of 128) and row padding to the tile sizes.
    d_in_p = _round_up(d_in, 128)
    d_out_p = _round_up(d_out, 128)
    n_pow2 = max(128, pl.next_power_of_2(N))
    tm = min(tm, n_pow2)          # power-of-two tiles: one always divides the other
    tk = min(tk, n_pow2)
    n_pad = _round_up(N, max(tm, tk))

    f32 = jnp.float32
    adj_p = jnp.zeros((n_pad, n_pad), f32).at[:N, :N].set(adj.astype(f32))
    feat_p = jnp.zeros((n_pad, d_in_p), f32).at[:N, :d_in].set(feat.astype(f32))
    w_p = jnp.zeros((d_in_p, d_out_p), f32).at[:d_in, :d_out].set(w_t.astype(f32))
    b_p = jnp.zeros((1, d_out_p), f32).at[0, :d_out].set(b.astype(f32))
    eps_arr = jnp.asarray([eps], dtype=f32)

    grid = (n_pad // tm, n_pad // tk)

    # Algebraic reorder: if the (padded) output width is narrower than the
    # (padded) input width, transform first and aggregate the narrower HW.
    reorder = d_out_p < d_in_p
    if reorder:
        agg_feat = _apply_linear(feat_p, w_p, tm=tm)   # (n_pad, d_out_p)
        d_agg = d_out_p
        kernel = _gin_agg_only_kernel
        tail_specs = [pl.BlockSpec((1, d_out_p), lambda i, k: (0, 0))]   # bias
        tail_inputs = [b_p]
        flops = 2.0 * N * d_in * d_out + 2.0 * N * N * d_out
    else:
        agg_feat = feat_p
        d_agg = d_in_p
        kernel = _gin_agg_then_linear_kernel
        tail_specs = [
            pl.BlockSpec((d_in_p, d_out_p), lambda i, k: (0, 0)),        # W.T
            pl.BlockSpec((1, d_out_p), lambda i, k: (0, 0)),             # bias
        ]
        tail_inputs = [w_p, b_p]
        flops = 2.0 * N * N * d_in + 2.0 * N * d_in * d_out

    in_specs = [
        pl.BlockSpec(memory_space=pltpu.MemorySpace.SMEM),               # eps
        pl.BlockSpec((tm, tk), lambda i, k: (i, k)),                     # adj tile
        pl.BlockSpec((tk, d_agg), lambda i, k: (k, 0)),                  # k-slice
        pl.BlockSpec((tm, d_agg), lambda i, k: (i, 0)),                  # i-slice
    ] + tail_specs
    inputs = [eps_arr, adj_p, agg_feat, agg_feat] + tail_inputs

    # Explicit VMEM budget (BlockSpec double-buffers every input) + headroom.
    vmem_need = 4 * (
        2 * tm * tk                 # adjacency tile
        + 2 * tk * d_agg            # aggregation k-slice
        + 2 * tm * d_agg            # skip i-slice
        + 2 * d_in_p * d_out_p      # weight (path A)
        + 2 * d_out_p               # bias
        + 2 * tm * d_out_p          # output tile
        + tm * d_agg                # accumulator scratch
    )
    vmem_limit = int(min(max(vmem_need + (4 << 20), 16 << 20), 96 << 20))

    cost = pl.CostEstimate(
        flops=int(flops),
        transcendentals=0,
        bytes_accessed=int(4 * (n_pad * n_pad + 2 * n_pad * d_agg
                                + d_in_p * d_out_p + d_out_p
                                + n_pad * d_out_p)),
    )

    out_padded = pl.pallas_call(
        kernel,
        out_shape=jax.ShapeDtypeStruct((n_pad, d_out_p), jnp.float32),
        grid_spec=pltpu.PrefetchScalarGridSpec(
            num_scalar_prefetch=0,
            grid=grid,
            in_specs=in_specs,
            out_specs=pl.BlockSpec((tm, d_out_p), lambda i, k: (i, 0)),
            scratch_shapes=[pltpu.VMEM((tm, d_agg), jnp.float32)],
        ),
        compiler_params=pltpu.CompilerParams(
            dimension_semantics=("parallel", "arbitrary"),
            vmem_limit_bytes=vmem_limit,
        ),
        cost_estimate=cost,
    )(*inputs)

    return out_padded[:N, :d_out]


def build_dense_adjacency(src, dst, num_nodes, edge_weight=None):
    """A[i, j] = weight of edge j -> i (sum aggregation == A @ H)."""
    w = edge_weight if edge_weight is not None else jnp.ones(src.shape, jnp.float32)
    adj = jnp.zeros((num_nodes, num_nodes), jnp.float32)
    return adj.at[dst, src].add(w)


# --------------------------------------------------------------------------
# Demo / correctness check
# --------------------------------------------------------------------------
if __name__ == "__main__":
    def reference(adj, feat, w, b, eps):
        neigh = adj @ feat
        rst = (1.0 + eps) * feat + neigh
        return jnp.maximum(rst @ w.T + b, 0.0)

    key = jax.random.PRNGKey(0)

    # ---- Case 1: tiny graph, Din == Dout (aggregate-then-transform path) ----
    k1, k2, k3, key = jax.random.split(key, 4)
    N, D_IN, D_OUT = 8, 32, 32
    src = jnp.array([0, 1, 2, 3, 2, 5, 6, 7, 4, 0], dtype=jnp.int32)
    dst = jnp.array([1, 2, 3, 4, 0, 3, 7, 6, 5, 2], dtype=jnp.int32)
    adj = build_dense_adjacency(src, dst, N)
    feat = jax.random.normal(k1, (N, D_IN), dtype=jnp.float32)
    w = jax.random.normal(k2, (D_OUT, D_IN), dtype=jnp.float32) / jnp.sqrt(D_IN)
    b = jax.random.normal(k3, (D_OUT,), dtype=jnp.float32) * 0.1
    eps = 0.0  # init_eps=0, learn_eps=False

    out = jax.block_until_ready(gin_conv(adj, feat, w.T, b, eps))
    ref = reference(adj, feat, w, b, eps)
    assert out.shape == (N, D_OUT)
    assert jnp.allclose(out, ref, atol=1e-4, rtol=1e-4), "case 1 mismatch"

    # ---- Case 2: larger graph, Dout < Din (transform-then-aggregate path,
    #              multi-row-tile grid) ----
    k1, k2, k3, k4, k5, key = jax.random.split(key, 6)
    N2, D_IN2, D_OUT2 = 300, 256, 64
    n_edges = 1200
    src2 = jax.random.randint(k1, (n_edges,), 0, N2)
    dst2 = jax.random.randint(k2, (n_edges,), 0, N2)
    adj2 = build_dense_adjacency(src2, dst2, N2)
    feat2 = jax.random.normal(k3, (N2, D_IN2), dtype=jnp.float32)
    w2 = jax.random.normal(k4, (D_OUT2, D_IN2), dtype=jnp.float32) / jnp.sqrt(D_IN2)
    b2 = jax.random.normal(k5, (D_OUT2,), dtype=jnp.float32) * 0.1
    eps2 = 0.1

    out2 = jax.block_until_ready(gin_conv(adj2, feat2, w2.T, b2, eps2))
    ref2 = reference(adj2, feat2, w2, b2, eps2)
    assert out2.shape == (N2, D_OUT2)
    # slightly relaxed: the algebraic reorder changes fp32 summation order
    assert jnp.allclose(out2, ref2, atol=5e-3, rtol=5e-3), "case 2 mismatch"

    print("KERNEL_OK")
</pallas_src>

<mosaic_0001>
module attributes {stable_mosaic.version = 11 : i64} {
  func.func @_gin_agg_then_linear_kernel(%arg0: i32, %arg1: i32, %arg2: memref<1xf32, #tpu.memory_space<smem>>, %arg3: memref<128x128xf32, #tpu.memory_space<vmem>>, %arg4: memref<128x128xf32, #tpu.memory_space<vmem>>, %arg5: memref<128x128xf32, #tpu.memory_space<vmem>>, %arg6: memref<128x128xf32, #tpu.memory_space<vmem>>, %arg7: memref<1x128xf32, #tpu.memory_space<vmem>>, %arg8: memref<128x128xf32, #tpu.memory_space<vmem>>, %arg9: memref<128x128xf32, #tpu.memory_space<vmem>>) attributes {dimension_semantics = [#tpu.dimension_semantics<parallel>, #tpu.dimension_semantics<arbitrary>], iteration_bounds = array<i64: 1, 1>, scalar_prefetch = 0 : i64, scratch_operands = 1 : i64, tpu.core_type = #tpu.core_type<tc>, window_params = [{transform_indices = @transform_0, window_bounds = array<i64: 1>}, {transform_indices = @transform_1, window_bounds = array<i64: 128, 128>}, {transform_indices = @transform_2, window_bounds = array<i64: 128, 128>}, {transform_indices = @transform_3, window_bounds = array<i64: 128, 128>}, {pipeline_mode = #tpu.pipeline_mode<synchronous>, transform_indices = @transform_4, window_bounds = array<i64: 128, 128>}, {pipeline_mode = #tpu.pipeline_mode<synchronous>, transform_indices = @transform_5, window_bounds = array<i64: 1, 128>}, {transform_indices = @transform_6, window_bounds = array<i64: 128, 128>}]} {
    %c0_i32 = arith.constant 0 : i32
    %0 = arith.cmpi eq, %arg1, %c0_i32 : i32
    %1 = arith.extui %0 : i1 to i32
    %c0_i32_0 = arith.constant 0 : i32
    %2 = arith.cmpi ne, %1, %c0_i32_0 : i32
    scf.if %2 {
      %cst_10 = arith.constant 0.000000e+00 : f32
      %12 = vector.broadcast %cst_10 : f32 to vector<128x128xf32>
      %c0_11 = arith.constant 0 : index
      %c0_12 = arith.constant 0 : index
      %13 = vector.load %arg9[%c0_11, %c0_12] : memref<128x128xf32, #tpu.memory_space<vmem>>, vector<128x128xf32>
      tpu.vector_store %arg9[%c0_11, %c0_12], %12 {strides = array<i32>} : memref<128x128xf32, #tpu.memory_space<vmem>>, vector<128x128xf32>,
    } else {
    }
    %c0 = arith.constant 0 : index
    %c0_1 = arith.constant 0 : index
    %3 = vector.load %arg9[%c0, %c0_1] : memref<128x128xf32, #tpu.memory_space<vmem>>, vector<128x128xf32>
    %c0_2 = arith.constant 0 : index
    %c0_3 = arith.constant 0 : index
    %4 = vector.load %arg3[%c0_2, %c0_3] : memref<128x128xf32, #tpu.memory_space<vmem>>, vector<128x128xf32>
    %c0_4 = arith.constant 0 : index
    %c0_5 = arith.constant 0 : index
    %5 = vector.load %arg4[%c0_4, %c0_5] : memref<128x128xf32, #tpu.memory_space<vmem>>, vector<128x128xf32>
    %cst = arith.constant dense<0.000000e+00> : vector<128x128xf32>
    %6 = tpu.matmul %4, %5, %cst {dimension_numbers = #tpu.dot_dimension_numbers<[1], [0], [0], [1], [0, 0, 1, 1], [], []>} : vector<128x128xf32>, vector<128x128xf32>, vector<128x128xf32> -> vector<128x128xf32>
    %7 = arith.addf %3, %6 : vector<128x128xf32>
    %c0_6 = arith.constant 0 : index
    %c0_7 = arith.constant 0 : index
    %8 = vector.load %arg9[%c0_6, %c0_7] : memref<128x128xf32, #tpu.memory_space<vmem>>, vector<128x128xf32>
    tpu.vector_store %arg9[%c0_6, %c0_7], %7 {strides = array<i32>} : memref<128x128xf32, #tpu.memory_space<vmem>>, vector<128x128xf32>,
    %c0_i32_8 = arith.constant 0 : i32
    %9 = arith.cmpi eq, %arg1, %c0_i32_8 : i32
    %10 = arith.extui %9 : i1 to i32
    %c0_i32_9 = arith.constant 0 : i32
    %11 = arith.cmpi ne, %10, %c0_i32_9 : i32
    scf.if %11 {
      %c0_10 = arith.constant 0 : index
      %12 = memref.load %arg2[%c0_10] : memref<1xf32, #tpu.memory_space<smem>>
      %cst_11 = arith.constant 1.000000e+00 : f32
      %13 = arith.addf %cst_11, %12 : f32
      %c0_12 = arith.constant 0 : index
      %c0_13 = arith.constant 0 : index
      %14 = vector.load %arg5[%c0_12, %c0_13] : memref<128x128xf32, #tpu.memory_space<vmem>>, vector<128x128xf32>
      %15 = vector.broadcast %13 : f32 to vector<128x128xf32>
      %16 = arith.mulf %15, %14 : vector<128x128xf32>
      %c0_14 = arith.constant 0 : index
      %c0_15 = arith.constant 0 : index
      %17 = vector.load %arg9[%c0_14, %c0_15] : memref<128x128xf32, #tpu.memory_space<vmem>>, vector<128x128xf32>
      %18 = arith.addf %16, %17 : vector<128x128xf32>
      %c0_16 = arith.constant 0 : index
      %c0_17 = arith.constant 0 : index
      %19 = vector.load %arg6[%c0_16, %c0_17] : memref<128x128xf32, #tpu.memory_space<vmem>>, vector<128x128xf32>
      %cst_18 = arith.constant dense<0.000000e+00> : vector<128x128xf32>
      %20 = tpu.matmul %18, %19, %cst_18 {dimension_numbers = #tpu.dot_dimension_numbers<[1], [0], [0], [1], [0, 0, 1, 1], [], []>} : vector<128x128xf32>, vector<128x128xf32>, vector<128x128xf32> -> vector<128x128xf32>
      %c0_19 = arith.constant 0 : index
      %c0_20 = arith.constant 0 : index
      %21 = vector.load %arg7[%c0_19, %c0_20] : memref<1x128xf32, #tpu.memory_space<vmem>>, vector<1x128xf32>
      %22 = vector.broadcast %21 : vector<1x128xf32> to vector<128x128xf32>
      %23 = arith.addf %20, %22 : vector<128x128xf32>
      %cst_21 = arith.constant 0.000000e+00 : f32
      %24 = vector.broadcast %cst_21 : f32 to vector<128x128xf32>
      %25 = arith.maximumf %23, %24 : vector<128x128xf32>
      %c0_22 = arith.constant 0 : index
      %c0_23 = arith.constant 0 : index
      %26 = vector.load %arg8[%c0_22, %c0_23] : memref<128x128xf32, #tpu.memory_space<vmem>>, vector<128x128xf32>
      tpu.vector_store %arg8[%c0_22, %c0_23], %25 {strides = array<i32>} : memref<128x128xf32, #tpu.memory_space<vmem>>, vector<128x128xf32>,
    } else {
    }
    return
  }
  func.func @transform_0(%arg0: i32, %arg1: i32) -> i32 {
    %c0_i32 = arith.constant 0 : i32
    %c0_i32_0 = arith.constant 0 : i32
    return %c0_i32 : i32
  }
  func.func @transform_1(%arg0: i32, %arg1: i32) -> (i32, i32) {
    %c0_i32 = arith.constant 0 : i32
    return %arg0, %arg1 : i32, i32
  }
  func.func @transform_2(%arg0: i32, %arg1: i32) -> (i32, i32) {
    %c0_i32 = arith.constant 0 : i32
    %c0_i32_0 = arith.constant 0 : i32
    return %arg1, %c0_i32 : i32, i32
  }
  func.func @transform_3(%arg0: i32, %arg1: i32) -> (i32, i32) {
    %c0_i32 = arith.constant 0 : i32
    %c0_i32_0 = arith.constant 0 : i32
    return %arg0, %c0_i32 : i32, i32
  }
  func.func @transform_4(%arg0: i32, %arg1: i32) -> (i32, i32) {
    %c0_i32 = arith.constant 0 : i32
    %c0_i32_0 = arith.constant 0 : i32
    %c0_i32_1 = arith.constant 0 : i32
    return %c0_i32, %c0_i32_0 : i32, i32
  }
  func.func @transform_5(%arg0: i32, %arg1: i32) -> (i32, i32) {
    %c0_i32 = arith.constant 0 : i32
    %c0_i32_0 = arith.constant 0 : i32
    %c0_i32_1 = arith.constant 0 : i32
    return %c0_i32, %c0_i32_0 : i32, i32
  }
  func.func @transform_6(%arg0: i32, %arg1: i32) -> (i32, i32) {
    %c0_i32 = arith.constant 0 : i32
    %c0_i32_0 = arith.constant 0 : i32
    return %arg0, %c0_i32 : i32, i32
  }
}

</mosaic_0001>

<bundles_post_ra>
// kernel: tpu_custom_call.1
= control target key start
LH: loop header
LB: loop body
LE: loop exit
PB: predicated region body
PF: predicated region fallthrough
CT: control target
= control target key end

     0   :  { %12 = vsyncpa [#allocation5], 0  ;;  %s743_s0 = inlined_call_operand.<no memory space> [shape: f32[1], index: 0, kind: input, shape index: {}]   ;;  %s744_s1 = inlined_call_operand.hbm [shape: f32[128,128], index: 1, kind: input, shape index: {}]   ;;  %s745_s2 = inlined_call_operand.hbm [shape: f32[128,128], index: 2, kind: input, shape index: {}]   ;;  %s746_s3 = inlined_call_operand.hbm [shape: f32[128,128], index: 3, kind: input, shape index: {}]   ;;  %s747_s4 = inlined_call_operand.hbm [shape: f32[128,128], index: 4, kind: input, shape index: {}]   ;;  %s748_s5 = inlined_call_operand.vmem [shape: f32[1,128], index: 5, kind: input, shape index: {}]   ;;  %s749_s6 = inlined_call_operand.hbm [shape: f32[128,128], index: 6, kind: output, shape index: {}]  }
   0x1   :  { %13 = vsyncpa [#allocation8], 0 }
   0x2   :  { %14 = vsyncpa [#allocation11], 0 }
   0x3   :  { %15 = vsyncpa [#allocation6], 0  ;;  %s35_s23 = sshll.u32 %s745_s2, 4  ;;  %s629_s24 = smov [#allocation7]   ;;  %s36_s23 = int_to_ptr.hbm [resolvable:$true] %s35_s23 }
   0x4   :  { %s37_s25 = sshll.u32 %s629_s24, 4  ;;  %s22_s28 = sshll.u32 %s744_s1, 4  ;;  %s38_s25 = int_to_ptr.vmem [resolvable:$true] %s37_s25  ;;  %s23_s28 = int_to_ptr.hbm [resolvable:$true] %s22_s28 }
   0x5   :  { %s630_s29 = smov 128   ;;  %s631_s30 = smov 8  }
   0x6   :  { %43 = dma.hbm_to_vmem [thread:$0]  %s36_s23, 2048, %s38_s25, [#allocation8], %s630_s29, %s630_s29, %s631_s30  }
   0x7   :  { %s632_s7 = smov [#allocation4]   ;;  %s48_s2 = sshll.u32 %s746_s3, 4  ;;  %s49_s2 = int_to_ptr.hbm [resolvable:$true] %s48_s2 }
   0x8   :  { %s24_s8 = sshll.u32 %s632_s7, 4  ;;  %s61_s12 = sshll.u32 %s747_s4, 4  ;;  %s25_s8 = int_to_ptr.vmem [resolvable:$true] %s24_s8  ;;  %s62_s12 = int_to_ptr.hbm [resolvable:$true] %s61_s12 }
   0x9   :  { %30 = dma.hbm_to_vmem [thread:$0]  %s23_s28, 2048, %s25_s8, [#allocation5], %s630_s29, %s630_s29, %s631_s30  }
   0xa   :  { %s633_s13 = smov [#allocation9]   ;;  %s634_s15 = smov [#allocation10]  }
   0xb   :  { %s50_s14 = sshll.u32 %s633_s13, 4  ;;  %s63_s3 = sshll.u32 %s634_s15, 4  ;;  %s51_s14 = int_to_ptr.vmem [resolvable:$true] %s50_s14  ;;  %s64_s3 = int_to_ptr.vmem [resolvable:$true] %s63_s3 }
   0xc   :  { %56 = dma.hbm_to_vmem [thread:$0]  %s49_s2, 2048, %s51_s14, [#allocation8], %s630_s29, %s630_s29, %s631_s30  }
   0xd   :  { %69 = dma.hbm_to_vmem [thread:$0]  %s62_s12, 2048, %s64_s3, [#allocation11], %s630_s29, %s630_s29, %s631_s30  }
   0xe   :  { %621 = dma.done.wait [#allocation5], 2048  }
   0xf   :  { %622 = vsyncadd [#allocation5], 4294965248 }
  0x10   :  { %623 = dma.done.wait [#allocation8], 4096  }
  0x11   :  { %624 = vsyncadd [#allocation8], 4294963200 }
  0x12   :  { %625 = dma.done.wait [#allocation11], 2048  }
  0x13   :  { %626 = vsyncadd [#allocation11], 4294965248  ;;  %v155_v0 = vld [vmem:[#allocation7 + $0x78] sm:$0xff]  ;;  %v154_v1 = vld [vmem:[#allocation7 + $0x70] sm:$0xff]  ;;  %s257_s17 = sadd.f32 1.0, %s743_s0  ;;  %s446_s22 = sshll.u32 %s749_s6, 4  ;;  %s447_s22 = int_to_ptr.hbm [resolvable:$true] %s446_s22 }
  0x14   :  { %461 = vmatpush.msra.mxu2 %v155_v0  ;;  %156 = vmatpush.msra.mxu0 %v155_v0  ;;  %v153_v2 = vld [vmem:[#allocation7 + $0x68] sm:$0xff]  ;;  %v152_v3 = vld [vmem:[#allocation7 + $0x60] sm:$0xff]  ;;  %v151_v4 = vld [vmem:[#allocation7 + $0x58] sm:$0xff] }
  0x15   :  { %v150_v5 = vld [vmem:[#allocation7 + $0x50] sm:$0xff]  ;;  %v149_v6 = vld [vmem:[#allocation7 + $0x48] sm:$0xff]  ;;  %v148_v7 = vld [vmem:[#allocation7 + $0x40] sm:$0xff]  ;;  %v698_v49 = vstv %s257_s17 }
  0x16   :  { %462 = vmatpush.msra.mxu2 %v154_v1  ;;  %157 = vmatpush.msra.mxu0 %v154_v1  ;;  %v147_v8 = vld [vmem:[#allocation7 + $0x38] sm:$0xff]  ;;  %v146_v9 = vld [vmem:[#allocation7 + $0x30] sm:$0xff]  ;;  %v145_v10 = vld [vmem:[#allocation7 + $0x28] sm:$0xff] }
  0x17   :  { %v144_v11 = vld [vmem:[#allocation7 + $0x20] sm:$0xff]  ;;  %v143_v12 = vld [vmem:[#allocation7 + $0x18] sm:$0xff]  ;;  %v142_v13 = vld [vmem:[#allocation7 + $0x10] sm:$0xff] }
  0x18   :  { %463 = vmatpush.msra.mxu2 %v153_v2  ;;  %158 = vmatpush.msra.mxu0 %v153_v2  ;;  %v141_v14 = vld [vmem:[#allocation7 + $0x8] sm:$0xff]  ;;  %v140_v15 = vld [vmem:[#allocation7] sm:$0xff]  ;;  %v134_v20 = vld [vmem:[#allocation4 + $0x50] sm:$0xff] }
  0x19   :  { %v132_v16 = vld [vmem:[#allocation4 + $0x40] sm:$0xff]  ;;  %v133_v18 = vld [vmem:[#allocation4 + $0x48] sm:$0xff]  ;;  %v126_v21 = vld [vmem:[#allocation4 + $0x10] sm:$0xff] }
  0x1a   :  { %464 = vmatpush.msra.mxu2 %v152_v3  ;;  %159 = vmatpush.msra.mxu0 %v152_v3  ;;  %v124_v17 = vld [vmem:[#allocation4] sm:$0xff]  ;;  %v125_v19 = vld [vmem:[#allocation4 + $0x8] sm:$0xff]  ;;  %v135_v22 = vld [vmem:[#allocation4 + $0x58] sm:$0xff] }
  0x1b   :  { %v127_v23 = vld [vmem:[#allocation4 + $0x18] sm:$0xff]  ;;  %v337_v25 = vld [vmem:[#allocation10 + $0x70] sm:$0xff]  ;;  %v336_v26 = vld [vmem:[#allocation10 + $0x68] sm:$0xff] }
  0x1c   :  { %465 = vmatpush.msra.mxu2 %v151_v4  ;;  %160 = vmatpush.msra.mxu0 %v151_v4  ;;  %v338_v24 = vld [vmem:[#allocation10 + $0x78] sm:$0xff]  ;;  %v335_v27 = vld [vmem:[#allocation10 + $0x60] sm:$0xff]  ;;  %v333_v31 = vld [vmem:[#allocation10 + $0x50] sm:$0xff] }
  0x1d   :  { %477 = vmatpush.msra.mxu3 %v338_v24  ;;  %343 = vmatpush.msra.mxu1 %v338_v24  ;;  %v136_v28 = vld [vmem:[#allocation4 + $0x60] sm:$0xff]  ;;  %v334_v30 = vld [vmem:[#allocation10 + $0x58] sm:$0xff]  ;;  %v332_v32 = vld [vmem:[#allocation10 + $0x48] sm:$0xff] }
  0x1e   :  { %466 = vmatpush.msra.mxu2 %v150_v5  ;;  %161 = vmatpush.msra.mxu0 %v150_v5  ;;  %v128_v29 = vld [vmem:[#allocation4 + $0x20] sm:$0xff]  ;;  %v137_v34 = vld [vmem:[#allocation4 + $0x68] sm:$0xff]  ;;  %v330_v36 = vld [vmem:[#allocation10 + $0x38] sm:$0xff] }
  0x1f   :  { %478 = vmatpush.msra.mxu3 %v337_v25  ;;  %344 = vmatpush.msra.mxu1 %v337_v25  ;;  %v331_v33 = vld [vmem:[#allocation10 + $0x40] sm:$0xff]  ;;  %v129_v35 = vld [vmem:[#allocation4 + $0x28] sm:$0xff]  ;;  %v329_v37 = vld [vmem:[#allocation10 + $0x30] sm:$0xff] }
  0x20   :  { %467 = vmatpush.msra.mxu2 %v149_v6  ;;  %162 = vmatpush.msra.mxu0 %v149_v6  ;;  %v328_v38 = vld [vmem:[#allocation10 + $0x28] sm:$0xff]  ;;  %v327_v39 = vld [vmem:[#allocation10 + $0x20] sm:$0xff]  ;;  %v138_v40 = vld [vmem:[#allocation4 + $0x70] sm:$0xff] }
  0x21   :  { %479 = vmatpush.msra.mxu3 %v336_v26  ;;  %345 = vmatpush.msra.mxu1 %v336_v26  ;;  %v130_v41 = vld [vmem:[#allocation4 + $0x30] sm:$0xff]  ;;  %v326_v42 = vld [vmem:[#allocation10 + $0x18] sm:$0xff]  ;;  %v324_v46 = vld [vmem:[#allocation10 + $0x8] sm:$0xff] }
  0x22   :  { %468 = vmatpush.msra.mxu2 %v148_v7  ;;  %163 = vmatpush.msra.mxu0 %v148_v7  ;;  %v325_v43 = vld [vmem:[#allocation10 + $0x10] sm:$0xff]  ;;  %v139_v44 = vld [vmem:[#allocation4 + $0x78] sm:$0xff]  ;;  %v323_v47 = vld [vmem:[#allocation10] sm:$0xff] }
  0x23   :  { %480 = vmatpush.msra.mxu3 %v335_v27  ;;  %346 = vmatpush.msra.mxu1 %v335_v27  ;;  %v131_v45 = vld [vmem:[#allocation4 + $0x38] sm:$0xff]  ;;  %v258_v48 = vld [vmem:[#allocation9] sm:$0xff]  ;;  %v259_v54 = vld [vmem:[#allocation9 + $0x8] sm:$0xff] }
  0x24   :  { %469 = vmatpush.msra.mxu2 %v147_v8  ;;  %164 = vmatpush.msra.mxu0 %v147_v8  ;;  %v275_v50 = vmul.f32 %v698_v49, %v258_v48  ;;  %v266_v51 = vld [vmem:[#allocation9 + $0x40] sm:$0xff]  ;;  %v276_v56 = vmul.f32 %v698_v49, %v259_v54  ;;  %v267_v59 = vld [vmem:[#allocation9 + $0x48] sm:$0xff]  ;;  %v260_v62 = vld [vmem:[#allocation9 + $0x10] sm:$0xff] }
  0x25   :  { %481 = vmatpush.msra.mxu3 %v334_v30  ;;  %347 = vmatpush.msra.mxu1 %v334_v30  ;;  %v283_v55 = vmul.f32 %v698_v49, %v266_v51  ;;  %v284_v63 = vmul.f32 %v698_v49, %v267_v59  ;;  %v277_v0 = vmul.f32 %v698_v49, %v260_v62  ;;  %v268_v3 = vld [vmem:[#allocation9 + $0x50] sm:$0xff]  ;;  %v261_v6 = vld [vmem:[#allocation9 + $0x18] sm:$0xff]  ;;  %v271_v27 = vld [vmem:[#allocation9 + $0x68] sm:$0xff] }
  0x26   :  { %470 = vmatpush.msra.mxu2 %v146_v9  ;;  %165 = vmatpush.msra.mxu0 %v146_v9  ;;  %v285_v7 = vmul.f32 %v698_v49, %v268_v3  ;;  %v278_v8 = vmul.f32 %v698_v49, %v261_v6  ;;  %v264_v30 = vld [vmem:[#allocation9 + $0x30] sm:$0xff] }
  0x27   :  { %482 = vmatpush.msra.mxu3 %v333_v31  ;;  %348 = vmatpush.msra.mxu1 %v333_v31  ;;  %v288_v31 = vmul.f32 %v698_v49, %v271_v27 }
  0x28   :  { %471 = vmatpush.msra.mxu2 %v145_v10  ;;  %166 = vmatpush.msra.mxu0 %v145_v10 }
  0x29   :  { %483 = vmatpush.msra.mxu3 %v332_v32  ;;  %349 = vmatpush.msra.mxu1 %v332_v32  ;;  %v281_v32 = vmul.f32 %v698_v49, %v264_v30 }
  0x2a   :  { %472 = vmatpush.msra.mxu2 %v144_v11  ;;  %167 = vmatpush.msra.mxu0 %v144_v11  ;;  %v269_v11 = vld [vmem:[#allocation9 + $0x58] sm:$0xff] }
  0x2b   :  { %484 = vmatpush.msra.mxu3 %v331_v33  ;;  %350 = vmatpush.msra.mxu1 %v331_v33 }
  0x2c   :  { %473 = vmatpush.msra.mxu2 %v143_v12  ;;  %168 = vmatpush.msra.mxu0 %v143_v12 }
  0x2d   :  { %485 = vmatpush.msra.mxu3 %v330_v36  ;;  %351 = vmatpush.msra.mxu1 %v330_v36 }
  0x2e   :  { %474 = vmatpush.msra.mxu2 %v142_v13  ;;  %169 = vmatpush.msra.mxu0 %v142_v13 }
  0x2f   :  { %486 = vmatpush.msra.mxu3 %v329_v37  ;;  %352 = vmatpush.msra.mxu1 %v329_v37 }
  0x30   :  { %475 = vmatpush.msra.mxu2 %v141_v14  ;;  %170 = vmatpush.msra.mxu0 %v141_v14  ;;  %v262_v14 = vld [vmem:[#allocation9 + $0x20] sm:$0xff] }
  0x31   :  { %487 = vmatpush.msra.mxu3 %v328_v38  ;;  %353 = vmatpush.msra.mxu1 %v328_v38  ;;  %v265_v38 = vld [vmem:[#allocation9 + $0x38] sm:$0xff] }
  0x32   :  { %476 = vmatpush.msra.mxu2 %v140_v15  ;;  %171 = vmatpush.msra.mxu0 %v140_v15  ;;  %v286_v15 = vmul.f32 %v698_v49, %v269_v11 }
  0x33   :  { %196 = vmatmul.f32.vlgmr.msra.gmra.mxu2 %v132_v16  ;;  %172 = vmatmul.f32.vlgmr.msra.gmra.mxu0 %v124_v17  ;;  %v279_v16 = vmul.f32 %v698_v49, %v262_v14 }
  0x34   :  { %488 = vmatpush.msra.mxu3 %v327_v39  ;;  %354 = vmatpush.msra.mxu1 %v327_v39 }
  0x36   :  { %489 = vmatpush.msra.mxu3 %v326_v42  ;;  %355 = vmatpush.msra.mxu1 %v326_v42 }
  0x38   :  { %490 = vmatpush.msra.mxu3 %v325_v43  ;;  %356 = vmatpush.msra.mxu1 %v325_v43  ;;  %v273_v43 = vld [vmem:[#allocation9 + $0x78] sm:$0xff] }
  0x3a   :  { %491 = vmatpush.msra.mxu3 %v324_v46  ;;  %357 = vmatpush.msra.mxu1 %v324_v46  ;;  %v290_v46 = vmul.f32 %v698_v49, %v273_v43 }
  0x3b   :  { %199 = vmatmul.f32.gmra.mxu2 %v133_v18  ;;  %175 = vmatmul.f32.gmra.mxu0 %v125_v19  ;;  %v270_v19 = vld [vmem:[#allocation9 + $0x60] sm:$0xff] }
  0x3c   :  { %492 = vmatpush.msra.mxu3 %v323_v47  ;;  %358 = vmatpush.msra.mxu1 %v323_v47 }
  0x43   :  { %202 = vmatmul.f32.gmra.mxu2 %v134_v20  ;;  %178 = vmatmul.f32.gmra.mxu0 %v126_v21 }
  0x4b   :  { %205 = vmatmul.f32.gmra.mxu2 %v135_v22  ;;  %181 = vmatmul.f32.gmra.mxu0 %v127_v23  ;;  %v263_v22 = vld [vmem:[#allocation9 + $0x28] sm:$0xff]  ;;  %v287_v23 = vmul.f32 %v698_v49, %v270_v19 }
  0x4c   :  { %v280_v24 = vmul.f32 %v698_v49, %v263_v22 }
  0x53   :  { %208 = vmatmul.f32.gmra.mxu2 %v136_v28  ;;  %184 = vmatmul.f32.gmra.mxu0 %v128_v29 }
  0x5b   :  { %211 = vmatmul.f32.gmra.mxu2 %v137_v34  ;;  %187 = vmatmul.f32.gmra.mxu0 %v129_v35  ;;  %v272_v35 = vld [vmem:[#allocation9 + $0x70] sm:$0xff] }
  0x5c   :  { %v289_v39 = vmul.f32 %v698_v49, %v272_v35 }
  0x63   :  { %214 = vmatmul.f32.gmra.mxu2 %v138_v40  ;;  %190 = vmatmul.f32.gmra.mxu0 %v130_v41  ;;  %v282_v40 = vmul.f32 %v698_v49, %v265_v38 }
  0x6b   :  { %217 = vmatmul.f32.gmra.mxu2 %v139_v44  ;;  %193 = vmatmul.f32.gmra.mxu0 %v131_v45 }
  0xb0   :  { %v173_v52 = vpop.f32.mrf.mxu0 }
  0xb1   :  { %v307_v53 = vadd.f32 %v275_v50, %v173_v52  ;;  %v719_v50 = vld [vmem:[%s748_s5] ss:$0 sm:$0xff]  ;;  %s635_s5 = smov [#allocation12]  }
  0xb2   :  { %s444_s19 = sshll.u32 %s635_s5, 4  ;;  %s445_s19 = int_to_ptr.vmem [resolvable:$true] %s444_s19 }
  0xb3   :  { %359 = vmatmul.f32.vlgmr.msra.gmra.mxu1 %v307_v53 }
  0xb6   :  { %v197_v57 = vpop.f32.mrf.mxu2 }
  0xb7   :  { %v315_v58 = vadd.f32 %v283_v55, %v197_v57 }
  0xb8   :  { %v176_v60 = vpop.f32.mrf.mxu0 }
  0xb9   :  { %383 = vmatmul.f32.vlgmr.msra.gmra.mxu3 %v315_v58  ;;  %v308_v61 = vadd.f32 %v276_v56, %v176_v60 }
  0xbb   :  { %362 = vmatmul.f32.gmra.mxu1 %v308_v61 }
  0xbe   :  { %v200_v1 = vpop.f32.mrf.mxu2 }
  0xbf   :  { %v316_v2 = vadd.f32 %v284_v63, %v200_v1 }
  0xc0   :  { %v179_v4 = vpop.f32.mrf.mxu0 }
  0xc1   :  { %386 = vmatmul.f32.gmra.mxu3 %v316_v2  ;;  %v309_v5 = vadd.f32 %v277_v0, %v179_v4 }
  0xc3   :  { %365 = vmatmul.f32.gmra.mxu1 %v309_v5 }
  0xc6   :  { %v203_v9 = vpop.f32.mrf.mxu2 }
  0xc7   :  { %v317_v10 = vadd.f32 %v285_v7, %v203_v9 }
  0xc8   :  { %v182_v12 = vpop.f32.mrf.mxu0 }
  0xc9   :  { %389 = vmatmul.f32.gmra.mxu3 %v317_v10  ;;  %v310_v13 = vadd.f32 %v278_v8, %v182_v12 }
  0xcb   :  { %368 = vmatmul.f32.gmra.mxu1 %v310_v13 }
  0xce   :  { %v206_v17 = vpop.f32.mrf.mxu2 }
  0xcf   :  { %v318_v18 = vadd.f32 %v286_v15, %v206_v17 }
  0xd0   :  { %v185_v20 = vpop.f32.mrf.mxu0 }
  0xd1   :  { %392 = vmatmul.f32.gmra.mxu3 %v318_v18  ;;  %v311_v21 = vadd.f32 %v279_v16, %v185_v20 }
  0xd3   :  { %371 = vmatmul.f32.gmra.mxu1 %v311_v21 }
  0xd6   :  { %v209_v25 = vpop.f32.mrf.mxu2 }
  0xd7   :  { %v319_v26 = vadd.f32 %v287_v23, %v209_v25 }
  0xd8   :  { %v188_v28 = vpop.f32.mrf.mxu0 }
  0xd9   :  { %395 = vmatmul.f32.gmra.mxu3 %v319_v26  ;;  %v312_v29 = vadd.f32 %v280_v24, %v188_v28 }
  0xdb   :  { %374 = vmatmul.f32.gmra.mxu1 %v312_v29 }
  0xde   :  { %v212_v33 = vpop.f32.mrf.mxu2 }
  0xdf   :  { %v320_v34 = vadd.f32 %v288_v31, %v212_v33 }
  0xe0   :  { %v191_v36 = vpop.f32.mrf.mxu0 }
  0xe1   :  { %398 = vmatmul.f32.gmra.mxu3 %v320_v34  ;;  %v313_v37 = vadd.f32 %v281_v32, %v191_v36 }
  0xe3   :  { %377 = vmatmul.f32.gmra.mxu1 %v313_v37 }
  0xe6   :  { %v215_v41 = vpop.f32.mrf.mxu2 }
  0xe7   :  { %v321_v42 = vadd.f32 %v289_v39, %v215_v41 }
  0xe8   :  { %v194_v44 = vpop.f32.mrf.mxu0 }
  0xe9   :  { %401 = vmatmul.f32.gmra.mxu3 %v321_v42  ;;  %v314_v45 = vadd.f32 %v282_v40, %v194_v44 }
  0xeb   :  { %380 = vmatmul.f32.gmra.mxu1 %v314_v45 }
  0xee   :  { %v218_v47 = vpop.f32.mrf.mxu2 }
  0xef   :  { %v322_v48 = vadd.f32 %v290_v46, %v218_v47 }
  0xf1   :  { %404 = vmatmul.f32.gmra.mxu3 %v322_v48 }
 0x130   :  { %v360_v51 = vpop.f32.mrf.mxu1 }
 0x131   :  { %v361_v52 = vadd.f32 %v719_v50, %v360_v51 }
 0x133   :  { %v408_v53 = vmax.f32 %v361_v52, 0.0 }
 0x135   :  { %424 = vst [vmem:[#allocation12] sm:$0xff] %v408_v53 }
 0x138   :  { %v363_v54 = vpop.f32.mrf.mxu1 }
 0x139   :  { %v364_v55 = vadd.f32 %v719_v50, %v363_v54 }
 0x13b   :  { %v409_v56 = vmax.f32 %v364_v55, 0.0 }
 0x13c   :  { %v384_v57 = vpop.f32.mrf.mxu3 }
 0x13d   :  { %v385_v49 = vadd.f32 %v719_v50, %v384_v57  ;;  %425 = vst [vmem:[#allocation12 + $0x8] sm:$0xff] %v409_v56 }
 0x13f   :  { %v416_v58 = vmax.f32 %v385_v49, 0.0 }
 0x140   :  { %v366_v59 = vpop.f32.mrf.mxu1 }
 0x141   :  { %432 = vst [vmem:[#allocation12 + $0x40] sm:$0xff] %v416_v58  ;;  %v367_v60 = vadd.f32 %v719_v50, %v366_v59 }
 0x143   :  { %v410_v61 = vmax.f32 %v367_v60, 0.0 }
 0x144   :  { %v387_v62 = vpop.f32.mrf.mxu3 }
 0x145   :  { %v388_v63 = vadd.f32 %v719_v50, %v387_v62  ;;  %426 = vst [vmem:[#allocation12 + $0x10] sm:$0xff] %v410_v61 }
 0x147   :  { %v417_v0 = vmax.f32 %v388_v63, 0.0 }
 0x148   :  { %v369_v1 = vpop.f32.mrf.mxu1 }
 0x149   :  { %433 = vst [vmem:[#allocation12 + $0x48] sm:$0xff] %v417_v0  ;;  %v370_v2 = vadd.f32 %v719_v50, %v369_v1 }
 0x14b   :  { %v411_v3 = vmax.f32 %v370_v2, 0.0 }
 0x14c   :  { %v390_v4 = vpop.f32.mrf.mxu3 }
 0x14d   :  { %v391_v5 = vadd.f32 %v719_v50, %v390_v4  ;;  %427 = vst [vmem:[#allocation12 + $0x18] sm:$0xff] %v411_v3 }
 0x14f   :  { %v418_v6 = vmax.f32 %v391_v5, 0.0 }
 0x150   :  { %v372_v7 = vpop.f32.mrf.mxu1 }
 0x151   :  { %434 = vst [vmem:[#allocation12 + $0x50] sm:$0xff] %v418_v6  ;;  %v373_v8 = vadd.f32 %v719_v50, %v372_v7 }
 0x153   :  { %v412_v9 = vmax.f32 %v373_v8, 0.0 }
 0x154   :  { %v393_v10 = vpop.f32.mrf.mxu3 }
 0x155   :  { %v394_v11 = vadd.f32 %v719_v50, %v393_v10  ;;  %428 = vst [vmem:[#allocation12 + $0x20] sm:$0xff] %v412_v9 }
 0x157   :  { %v419_v12 = vmax.f32 %v394_v11, 0.0 }
 0x158   :  { %v375_v13 = vpop.f32.mrf.mxu1 }
 0x159   :  { %435 = vst [vmem:[#allocation12 + $0x58] sm:$0xff] %v419_v12  ;;  %v376_v14 = vadd.f32 %v719_v50, %v375_v13 }
 0x15b   :  { %v413_v15 = vmax.f32 %v376_v14, 0.0 }
 0x15c   :  { %v396_v16 = vpop.f32.mrf.mxu3 }
 0x15d   :  { %v397_v17 = vadd.f32 %v719_v50, %v396_v16  ;;  %429 = vst [vmem:[#allocation12 + $0x28] sm:$0xff] %v413_v15 }
 0x15f   :  { %v420_v18 = vmax.f32 %v397_v17, 0.0 }
 0x160   :  { %v378_v19 = vpop.f32.mrf.mxu1 }
 0x161   :  { %436 = vst [vmem:[#allocation12 + $0x60] sm:$0xff] %v420_v18  ;;  %v379_v20 = vadd.f32 %v719_v50, %v378_v19 }
 0x163   :  { %v414_v21 = vmax.f32 %v379_v20, 0.0 }
 0x164   :  { %v399_v22 = vpop.f32.mrf.mxu3 }
 0x165   :  { %v400_v23 = vadd.f32 %v719_v50, %v399_v22  ;;  %430 = vst [vmem:[#allocation12 + $0x30] sm:$0xff] %v414_v21 }
 0x167   :  { %v421_v24 = vmax.f32 %v400_v23, 0.0 }
 0x168   :  { %v381_v25 = vpop.f32.mrf.mxu1 }
 0x169   :  { %437 = vst [vmem:[#allocation12 + $0x68] sm:$0xff] %v421_v24  ;;  %v382_v26 = vadd.f32 %v719_v50, %v381_v25 }
 0x16b   :  { %v415_v27 = vmax.f32 %v382_v26, 0.0 }
 0x16c   :  { %v402_v28 = vpop.f32.mrf.mxu3 }
 0x16d   :  { %v403_v29 = vadd.f32 %v719_v50, %v402_v28  ;;  %431 = vst [vmem:[#allocation12 + $0x38] sm:$0xff] %v415_v27 }
 0x16f   :  { %v422_v30 = vmax.f32 %v403_v29, 0.0 }
 0x171   :  { %438 = vst [vmem:[#allocation12 + $0x70] sm:$0xff] %v422_v30 }
 0x174   :  { %v405_v31 = vpop.f32.mrf.mxu3 }
 0x175   :  { %v406_v32 = vadd.f32 %v719_v50, %v405_v31 }
 0x177   :  { %v423_v33 = vmax.f32 %v406_v32, 0.0 }
 0x179   :  { %439 = vst [vmem:[#allocation12 + $0x78] sm:$0xff] %v423_v33 }
 0x17a   :  { %452 = dma.vmem_to_hbm [thread:$0]  %s445_s19, 2048, %s447_s22, [#allocation6], %s630_s29, %s630_s29, %s631_s30  }
 0x17b   :  { %627 = dma.done.wait [#allocation6], 2048  }
 0x17c   :  { %628 = vsyncadd [#allocation6], 4294965248 }
 0x17d   :  { %457 = vsyncpa [#allocation5], 1 }
 0x17e   :  { %458 = vsyncpa [#allocation8], 1 }
 0x17f   :  { %459 = vsyncpa [#allocation11], 1 }
 0x180   :  { %460 = vsyncpa [#allocation6], 1 }

</bundles_post_ra>
